<compile_context>
chip_gen: v7x
topology: tpu7x:2x2x1
jax: 0.10.0
libtpu: 0.0.40
codegen_flags: <defaults>
</compile_context>

<pallas_src>
import jax
import jax.numpy as jnp
from jax.experimental import pallas as pl
from jax.experimental.pallas import tpu as pltpu


def _round_up(n: int, m: int) -> int:
    return ((n + m - 1) // m) * m


def ann_kernel(x_ref, w1_ref, b1_ref, w2_ref, b2_ref, o_ref):
    # First linear: bf16 operands on the MXU, f32 accumulation.
    h = jnp.dot(x_ref[...], w1_ref[...], preferred_element_type=jnp.float32)
    # f32 epilogue: bias add (VPU), exp (EUP), approx reciprocal (EUP).
    h = h + b1_ref[...]
    h = pl.reciprocal(1.0 + jnp.exp(-h), approx=True)
    # Second linear: cast activation back to bf16 for the MXU.
    y = jnp.dot(h.astype(jnp.bfloat16), w2_ref[...],
                preferred_element_type=jnp.float32)
    y = y + b2_ref[...]
    y = pl.reciprocal(1.0 + jnp.exp(-y), approx=True)
    o_ref[...] = y.astype(o_ref.dtype)


def prepare_ann_params(w1, b1, w2, b2):
    """Pad + cast weights once (hoisted out of the per-call path).

    w1: (in_f, hid); b1: (1, hid) or (hid,); w2: (hid, hid); b2: (1, hid) or (hid,).
    Weights are (in, out), i.e. transposed vs. torch Linear storage, so the
    kernel computes x @ W + b directly.
    """
    in_f, hid = w1.shape
    in_p = _round_up(max(in_f, 1), 128)
    hid_p = _round_up(max(hid, 1), 128)
    w1p = jnp.zeros((in_p, hid_p), jnp.bfloat16).at[:in_f, :hid].set(
        w1.astype(jnp.bfloat16))
    b1p = jnp.zeros((1, hid_p), jnp.float32).at[:, :hid].set(
        jnp.reshape(b1, (1, -1)).astype(jnp.float32))
    w2p = jnp.zeros((hid_p, hid_p), jnp.bfloat16).at[:hid, :hid].set(
        w2.astype(jnp.bfloat16))
    b2p = jnp.zeros((1, hid_p), jnp.float32).at[:, :hid].set(
        jnp.reshape(b2, (1, -1)).astype(jnp.float32))
    return dict(w1=w1p, b1=b1p, w2=w2p, b2=b2p,
                in_f=in_f, hid=hid, in_p=in_p, hid_p=hid_p)


def _pick_tm(B: int, block_m: int) -> int:
    sub = 16  # bf16 packs 2 rows/sublane; keep batch tiles 16-row aligned.
    if B <= sub:
        return B  # single tile; block equals full batch dim (always legal)
    tm = min(block_m, _round_up(B, sub))
    # Ensure >= 2 grid steps when the batch is splittable so both v7x
    # TensorCores get a tile (grid axis is marked "parallel").
    if pl.cdiv(B, tm) < 2:
        tm = _round_up(pl.cdiv(B, 2), sub)
    return tm


def ann_forward_padded(x, params, *, block_m: int = 512):
    """x: (B, in_f). params: output of prepare_ann_params."""
    B, in_f = x.shape
    assert in_f == params["in_f"]
    in_p, hid_p, hid = params["in_p"], params["hid_p"], params["hid"]

    # Activation stream: fold the bf16 cast (and lane pad, only if needed)
    # into a single wrapper op -> kernel DMAs x at half width.
    if in_f == in_p:
        xp = x.astype(jnp.bfloat16)
    else:
        xp = jnp.zeros((B, in_p), jnp.bfloat16).at[:, :in_f].set(
            x.astype(jnp.bfloat16))

    tm = _pick_tm(B, block_m)
    grid = (pl.cdiv(B, tm),)

    # VMEM budget: resident weights (single-buffered) + double-buffered bf16
    # activation/output streams + f32 intermediates headroom.
    weight_bytes = in_p * hid_p * 2 + hid_p * hid_p * 2 + 2 * hid_p * 4
    stream_bytes = 2 * tm * in_p * 2 + 2 * tm * hid_p * 2
    scratch_bytes = 2 * tm * hid_p * 4
    need = 2 * weight_bytes + stream_bytes + scratch_bytes  # room for fallback
    vmem_limit = int(min(max(need + (8 << 20), 32 << 20), 64 << 20))

    flops = 2 * B * hid_p * (in_p + hid_p)
    transcendentals = 2 * B * hid_p
    bytes_accessed = (B * in_p * 2 + in_p * hid_p * 2 + hid_p * hid_p * 2
                      + 2 * hid_p * 4 + B * hid_p * 2)

    def run(single_buffer_weights: bool):
        resident_kw = ({"pipeline_mode": pl.Buffered(1)}
                       if single_buffer_weights else {})
        in_specs = [
            pl.BlockSpec((tm, in_p), lambda i: (i, 0)),                 # x stream
            pl.BlockSpec((in_p, hid_p), lambda i: (0, 0), **resident_kw),
            pl.BlockSpec((1, hid_p), lambda i: (0, 0), **resident_kw),
            pl.BlockSpec((hid_p, hid_p), lambda i: (0, 0), **resident_kw),
            pl.BlockSpec((1, hid_p), lambda i: (0, 0), **resident_kw),
        ]
        return pl.pallas_call(
            ann_kernel,
            out_shape=jax.ShapeDtypeStruct((B, hid_p), jnp.bfloat16),
            grid=grid,
            in_specs=in_specs,
            out_specs=pl.BlockSpec((tm, hid_p), lambda i: (i, 0)),
            compiler_params=pltpu.CompilerParams(
                dimension_semantics=("parallel",),
                vmem_limit_bytes=vmem_limit,
            ),
            cost_estimate=pl.CostEstimate(
                flops=flops,
                transcendentals=transcendentals,
                bytes_accessed=bytes_accessed,
            ),
        )(xp, params["w1"], params["b1"], params["w2"], params["b2"])

    try:
        out = run(True)
    except Exception:
        # Fallback: some JAX builds may not accept Buffered(1) on pallas_call
        # BlockSpecs; default double-buffering is only a VMEM-footprint cost.
        out = run(False)

    return out[:B, :hid].astype(x.dtype)


def ann_forward(x, w1, b1, w2, b2, *, block_m: int = 512):
    return ann_forward_padded(x, prepare_ann_params(w1, b1, w2, b2),
                              block_m=block_m)


def ann_reference(x, w1, b1, w2, b2):
    h = jax.nn.sigmoid(x @ w1 + b1)
    return jax.nn.sigmoid(h @ w2 + b2)


if __name__ == "__main__":
    # q has shape (in_features, hidden): mc = Linear(in_f, hid), mh = Linear(hid, hid)
    in_features = 16
    hidden = 32
    batch = 8

    key = jax.random.PRNGKey(0)
    kx, kw1, kb1, kw2, kb2 = jax.random.split(key, 5)

    x = jax.random.normal(kx, (batch, in_features), dtype=jnp.float32)

    # Deterministic init mimicking torch Linear's uniform(-1/sqrt(fan_in), ...).
    bound1 = 1.0 / (in_features ** 0.5)
    w1 = jax.random.uniform(kw1, (in_features, hidden), jnp.float32, -bound1, bound1)
    b1 = jax.random.uniform(kb1, (1, hidden), jnp.float32, -bound1, bound1)
    bound2 = 1.0 / (hidden ** 0.5)
    w2 = jax.random.uniform(kw2, (hidden, hidden), jnp.float32, -bound2, bound2)
    b2 = jax.random.uniform(kb2, (1, hidden), jnp.float32, -bound2, bound2)

    # Pad/cast the parameters once (hoisted out of the per-call path).
    params = prepare_ann_params(w1, b1, w2, b2)
    y = ann_forward_padded(x, params)
    y = jax.block_until_ready(y)

    y_ref = ann_reference(x, w1, b1, w2, b2)
    assert y.shape == (batch, hidden)
    # bf16 matmul operands / bf16 output / approx reciprocal -> loose tolerance.
    assert jnp.allclose(y, y_ref, atol=2e-2, rtol=2e-2)

    print("KERNEL_OK")
</pallas_src>

<mosaic_0001>
module attributes {stable_mosaic.version = 11 : i64} {
  func.func @ann_kernel(%arg0: i32, %arg1: memref<8x128xbf16, #tpu.memory_space<vmem>>, %arg2: memref<128x128xbf16, #tpu.memory_space<vmem>>, %arg3: memref<1x128xf32, #tpu.memory_space<vmem>>, %arg4: memref<128x128xbf16, #tpu.memory_space<vmem>>, %arg5: memref<1x128xf32, #tpu.memory_space<vmem>>, %arg6: memref<8x128xbf16, #tpu.memory_space<vmem>>) attributes {dimension_semantics = [#tpu.dimension_semantics<parallel>], iteration_bounds = array<i64: 1>, scalar_prefetch = 0 : i64, scratch_operands = 0 : i64, tpu.core_type = #tpu.core_type<tc>, window_params = [{transform_indices = @transform_0, window_bounds = array<i64: 8, 128>}, {pipeline_mode = #tpu.pipeline_mode<synchronous>, transform_indices = @transform_1, window_bounds = array<i64: 128, 128>}, {pipeline_mode = #tpu.pipeline_mode<synchronous>, transform_indices = @transform_2, window_bounds = array<i64: 1, 128>}, {pipeline_mode = #tpu.pipeline_mode<synchronous>, transform_indices = @transform_3, window_bounds = array<i64: 128, 128>}, {pipeline_mode = #tpu.pipeline_mode<synchronous>, transform_indices = @transform_4, window_bounds = array<i64: 1, 128>}, {transform_indices = @transform_5, window_bounds = array<i64: 8, 128>}]} {
    %c0 = arith.constant 0 : index
    %c0_0 = arith.constant 0 : index
    %0 = vector.load %arg1[%c0, %c0_0] : memref<8x128xbf16, #tpu.memory_space<vmem>>, vector<8x128xbf16>
    %c0_1 = arith.constant 0 : index
    %c0_2 = arith.constant 0 : index
    %1 = vector.load %arg2[%c0_1, %c0_2] : memref<128x128xbf16, #tpu.memory_space<vmem>>, vector<128x128xbf16>
    %cst = arith.constant dense<0.000000e+00> : vector<8x128xf32>
    %2 = tpu.matmul %0, %1, %cst {dimension_numbers = #tpu.dot_dimension_numbers<[1], [0], [0], [1], [0, 0, 1, 1], [], []>} : vector<8x128xbf16>, vector<128x128xbf16>, vector<8x128xf32> -> vector<8x128xf32>
    %c0_3 = arith.constant 0 : index
    %c0_4 = arith.constant 0 : index
    %3 = vector.load %arg3[%c0_3, %c0_4] : memref<1x128xf32, #tpu.memory_space<vmem>>, vector<1x128xf32>
    %4 = vector.broadcast %3 : vector<1x128xf32> to vector<8x128xf32>
    %5 = arith.addf %2, %4 : vector<8x128xf32>
    %cst_5 = arith.constant 0.000000e+00 : f32
    %6 = vector.broadcast %cst_5 : f32 to vector<8x128xf32>
    %7 = arith.subf %6, %5 : vector<8x128xf32>
    %8 = math.exp %7 : vector<8x128xf32>
    %cst_6 = arith.constant 1.000000e+00 : f32
    %9 = vector.broadcast %cst_6 : f32 to vector<8x128xf32>
    %10 = arith.addf %9, %8 : vector<8x128xf32>
    %11 = tpu.reciprocal %10 {approx = true} : vector<8x128xf32> -> vector<8x128xf32>
    %12 = arith.truncf %11 : vector<8x128xf32> to vector<8x128xbf16>
    %c0_7 = arith.constant 0 : index
    %c0_8 = arith.constant 0 : index
    %13 = vector.load %arg4[%c0_7, %c0_8] : memref<128x128xbf16, #tpu.memory_space<vmem>>, vector<128x128xbf16>
    %cst_9 = arith.constant dense<0.000000e+00> : vector<8x128xf32>
    %14 = tpu.matmul %12, %13, %cst_9 {dimension_numbers = #tpu.dot_dimension_numbers<[1], [0], [0], [1], [0, 0, 1, 1], [], []>} : vector<8x128xbf16>, vector<128x128xbf16>, vector<8x128xf32> -> vector<8x128xf32>
    %c0_10 = arith.constant 0 : index
    %c0_11 = arith.constant 0 : index
    %15 = vector.load %arg5[%c0_10, %c0_11] : memref<1x128xf32, #tpu.memory_space<vmem>>, vector<1x128xf32>
    %16 = vector.broadcast %15 : vector<1x128xf32> to vector<8x128xf32>
    %17 = arith.addf %14, %16 : vector<8x128xf32>
    %cst_12 = arith.constant 0.000000e+00 : f32
    %18 = vector.broadcast %cst_12 : f32 to vector<8x128xf32>
    %19 = arith.subf %18, %17 : vector<8x128xf32>
    %20 = math.exp %19 : vector<8x128xf32>
    %cst_13 = arith.constant 1.000000e+00 : f32
    %21 = vector.broadcast %cst_13 : f32 to vector<8x128xf32>
    %22 = arith.addf %21, %20 : vector<8x128xf32>
    %23 = tpu.reciprocal %22 {approx = true} : vector<8x128xf32> -> vector<8x128xf32>
    %24 = arith.truncf %23 : vector<8x128xf32> to vector<8x128xbf16>
    %c0_14 = arith.constant 0 : index
    %c0_15 = arith.constant 0 : index
    %25 = vector.load %arg6[%c0_14, %c0_15] : memref<8x128xbf16, #tpu.memory_space<vmem>>, vector<8x128xbf16>
    tpu.vector_store %arg6[%c0_14, %c0_15], %24 {strides = array<i32>} : memref<8x128xbf16, #tpu.memory_space<vmem>>, vector<8x128xbf16>,
    return
  }
  func.func @transform_0(%arg0: i32) -> (i32, i32) {
    %c0_i32 = arith.constant 0 : i32
    %c0_i32_0 = arith.constant 0 : i32
    return %arg0, %c0_i32 : i32, i32
  }
  func.func @transform_1(%arg0: i32) -> (i32, i32) {
    %c0_i32 = arith.constant 0 : i32
    %c0_i32_0 = arith.constant 0 : i32
    %c0_i32_1 = arith.constant 0 : i32
    return %c0_i32, %c0_i32_0 : i32, i32
  }
  func.func @transform_2(%arg0: i32) -> (i32, i32) {
    %c0_i32 = arith.constant 0 : i32
    %c0_i32_0 = arith.constant 0 : i32
    %c0_i32_1 = arith.constant 0 : i32
    return %c0_i32, %c0_i32_0 : i32, i32
  }
  func.func @transform_3(%arg0: i32) -> (i32, i32) {
    %c0_i32 = arith.constant 0 : i32
    %c0_i32_0 = arith.constant 0 : i32
    %c0_i32_1 = arith.constant 0 : i32
    return %c0_i32, %c0_i32_0 : i32, i32
  }
  func.func @transform_4(%arg0: i32) -> (i32, i32) {
    %c0_i32 = arith.constant 0 : i32
    %c0_i32_0 = arith.constant 0 : i32
    %c0_i32_1 = arith.constant 0 : i32
    return %c0_i32, %c0_i32_0 : i32, i32
  }
  func.func @transform_5(%arg0: i32) -> (i32, i32) {
    %c0_i32 = arith.constant 0 : i32
    %c0_i32_0 = arith.constant 0 : i32
    return %arg0, %c0_i32 : i32, i32
  }
}

module attributes {stable_mosaic.version = 11 : i64} {
  func.func @ann_kernel(%arg0: i32, %arg1: memref<8x128xbf16, #tpu.memory_space<vmem>>, %arg2: memref<128x128xbf16, #tpu.memory_space<vmem>>, %arg3: memref<1x128xf32, #tpu.memory_space<vmem>>, %arg4: memref<128x128xbf16, #tpu.memory_space<vmem>>, %arg5: memref<1x128xf32, #tpu.memory_space<vmem>>, %arg6: memref<8x128xbf16, #tpu.memory_space<vmem>>) attributes {dimension_semantics = [#tpu.dimension_semantics<parallel>], iteration_bounds = array<i64: 1>, scalar_prefetch = 0 : i64, scratch_operands = 0 : i64, tpu.core_type = #tpu.core_type<tc>, window_params = [{transform_indices = @transform_0, window_bounds = array<i64: 8, 128>}, {pipeline_mode = #tpu.pipeline_mode<synchronous>, transform_indices = @transform_1, window_bounds = array<i64: 128, 128>}, {pipeline_mode = #tpu.pipeline_mode<synchronous>, transform_indices = @transform_2, window_bounds = array<i64: 1, 128>}, {pipeline_mode = #tpu.pipeline_mode<synchronous>, transform_indices = @transform_3, window_bounds = array<i64: 128, 128>}, {pipeline_mode = #tpu.pipeline_mode<synchronous>, transform_indices = @transform_4, window_bounds = array<i64: 1, 128>}, {transform_indices = @transform_5, window_bounds = array<i64: 8, 128>}]} {
    %c0 = arith.constant 0 : index
    %c0_0 = arith.constant 0 : index
    %0 = vector.load %arg1[%c0, %c0_0] : memref<8x128xbf16, #tpu.memory_space<vmem>>, vector<8x128xbf16>
    %c0_1 = arith.constant 0 : index
    %c0_2 = arith.constant 0 : index
    %1 = vector.load %arg2[%c0_1, %c0_2] : memref<128x128xbf16, #tpu.memory_space<vmem>>, vector<128x128xbf16>
    %cst = arith.constant dense<0.000000e+00> : vector<8x128xf32>
    %2 = tpu.matmul %0, %1, %cst {dimension_numbers = #tpu.dot_dimension_numbers<[1], [0], [0], [1], [0, 0, 1, 1], [], []>} : vector<8x128xbf16>, vector<128x128xbf16>, vector<8x128xf32> -> vector<8x128xf32>
    %c0_3 = arith.constant 0 : index
    %c0_4 = arith.constant 0 : index
    %3 = vector.load %arg3[%c0_3, %c0_4] : memref<1x128xf32, #tpu.memory_space<vmem>>, vector<1x128xf32>
    %4 = vector.broadcast %3 : vector<1x128xf32> to vector<8x128xf32>
    %5 = arith.addf %2, %4 : vector<8x128xf32>
    %cst_5 = arith.constant 0.000000e+00 : f32
    %6 = vector.broadcast %cst_5 : f32 to vector<8x128xf32>
    %7 = arith.subf %6, %5 : vector<8x128xf32>
    %8 = math.exp %7 : vector<8x128xf32>
    %cst_6 = arith.constant 1.000000e+00 : f32
    %9 = vector.broadcast %cst_6 : f32 to vector<8x128xf32>
    %10 = arith.addf %9, %8 : vector<8x128xf32>
    %11 = tpu.reciprocal %10 {approx = true} : vector<8x128xf32> -> vector<8x128xf32>
    %12 = arith.truncf %11 : vector<8x128xf32> to vector<8x128xbf16>
    %c0_7 = arith.constant 0 : index
    %c0_8 = arith.constant 0 : index
    %13 = vector.load %arg4[%c0_7, %c0_8] : memref<128x128xbf16, #tpu.memory_space<vmem>>, vector<128x128xbf16>
    %cst_9 = arith.constant dense<0.000000e+00> : vector<8x128xf32>
    %14 = tpu.matmul %12, %13, %cst_9 {dimension_numbers = #tpu.dot_dimension_numbers<[1], [0], [0], [1], [0, 0, 1, 1], [], []>} : vector<8x128xbf16>, vector<128x128xbf16>, vector<8x128xf32> -> vector<8x128xf32>
    %c0_10 = arith.constant 0 : index
    %c0_11 = arith.constant 0 : index
    %15 = vector.load %arg5[%c0_10, %c0_11] : memref<1x128xf32, #tpu.memory_space<vmem>>, vector<1x128xf32>
    %16 = vector.broadcast %15 : vector<1x128xf32> to vector<8x128xf32>
    %17 = arith.addf %14, %16 : vector<8x128xf32>
    %cst_12 = arith.constant 0.000000e+00 : f32
    %18 = vector.broadcast %cst_12 : f32 to vector<8x128xf32>
    %19 = arith.subf %18, %17 : vector<8x128xf32>
    %20 = math.exp %19 : vector<8x128xf32>
    %cst_13 = arith.constant 1.000000e+00 : f32
    %21 = vector.broadcast %cst_13 : f32 to vector<8x128xf32>
    %22 = arith.addf %21, %20 : vector<8x128xf32>
    %23 = tpu.reciprocal %22 {approx = true} : vector<8x128xf32> -> vector<8x128xf32>
    %24 = arith.truncf %23 : vector<8x128xf32> to vector<8x128xbf16>
    %c0_14 = arith.constant 0 : index
    %c0_15 = arith.constant 0 : index
    %25 = vector.load %arg6[%c0_14, %c0_15] : memref<8x128xbf16, #tpu.memory_space<vmem>>, vector<8x128xbf16>
    tpu.vector_store %arg6[%c0_14, %c0_15], %24 {strides = array<i32>} : memref<8x128xbf16, #tpu.memory_space<vmem>>, vector<8x128xbf16>,
    return
  }
  func.func @transform_0(%arg0: i32) -> (i32, i32) {
    %c0_i32 = arith.constant 0 : i32
    %c0_i32_0 = arith.constant 0 : i32
    return %arg0, %c0_i32 : i32, i32
  }
  func.func @transform_1(%arg0: i32) -> (i32, i32) {
    %c0_i32 = arith.constant 0 : i32
    %c0_i32_0 = arith.constant 0 : i32
    %c0_i32_1 = arith.constant 0 : i32
    return %c0_i32, %c0_i32_0 : i32, i32
  }
  func.func @transform_2(%arg0: i32) -> (i32, i32) {
    %c0_i32 = arith.constant 0 : i32
    %c0_i32_0 = arith.constant 0 : i32
    %c0_i32_1 = arith.constant 0 : i32
    return %c0_i32, %c0_i32_0 : i32, i32
  }
  func.func @transform_3(%arg0: i32) -> (i32, i32) {
    %c0_i32 = arith.constant 0 : i32
    %c0_i32_0 = arith.constant 0 : i32
    %c0_i32_1 = arith.constant 0 : i32
    return %c0_i32, %c0_i32_0 : i32, i32
  }
  func.func @transform_4(%arg0: i32) -> (i32, i32) {
    %c0_i32 = arith.constant 0 : i32
    %c0_i32_0 = arith.constant 0 : i32
    %c0_i32_1 = arith.constant 0 : i32
    return %c0_i32, %c0_i32_0 : i32, i32
  }
  func.func @transform_5(%arg0: i32) -> (i32, i32) {
    %c0_i32 = arith.constant 0 : i32
    %c0_i32_0 = arith.constant 0 : i32
    return %arg0, %c0_i32 : i32, i32
  }
}

</mosaic_0001>

<bundles_post_ra>
// kernel: tpu_custom_call.1
= control target key start
LH: loop header
LB: loop body
LE: loop exit
PB: predicated region body
PF: predicated region fallthrough
CT: control target
= control target key end

     0   :  { %10 = vsyncpa [#allocation3], 0  ;;  %s613_s0 = inlined_call_operand.hbm [shape: bf16[8,128], index: 0, kind: input, shape index: {}]   ;;  %s614_s1 = inlined_call_operand.hbm [shape: bf16[128,128], index: 1, kind: input, shape index: {}]   ;;  %s615_s2 = inlined_call_operand.vmem [shape: f32[1,128], index: 2, kind: input, shape index: {}]   ;;  %s616_s3 = inlined_call_operand.hbm [shape: bf16[128,128], index: 3, kind: input, shape index: {}]   ;;  %s617_s4 = inlined_call_operand.vmem [shape: f32[1,128], index: 4, kind: input, shape index: {}]   ;;  %s618_s5 = inlined_call_operand.hbm [shape: bf16[8,128], index: 5, kind: output, shape index: {}]  }
   0x1   :  { %11 = vsyncpa [#allocation6], 0 }
   0x2   :  { %12 = vsyncpa [#allocation4], 0  ;;  %s515_s18 = smov [#allocation5]   ;;  %s421_s22 = scalar_lea.hbm %s614_s1, 1024 }
   0x3   :  { %s28_s19 = sshll.u32 %s515_s18, 4  ;;  %p422_p0 = scmp.ne.s32.totalorder %s614_s1, %s421_s22  ;;  %s29_s19 = int_to_ptr.vmem [resolvable:$true] %s28_s19 }
   0x4   :  { %p425_p1 = scmp.lt.u32.totalorder %s421_s22, %s614_s1 }
   0x6   :  { %p427_p2 = pnand %p425_p1, %p422_p0 }
   0x8   :  { %430 = shalt.err (!%p427_p2)
}
   0x9   :  { %s431_s27 = scalar_lea.vmem %s29_s19, 1024  ;;  %p436_p4 = scmp.lt.s32.totalorder %s29_s19, %s29_s19 }
   0xa   :  { %p432_p3 = scmp.ne.s32.totalorder %s29_s19, %s431_s27  ;;  %p437_p5 = scmp.lt.s32.totalorder %s431_s27, %s431_s27 }
   0xc   :  { %p438_p6 = por %p437_p5, %p436_p4 }
   0xe   :  { %p439_p7 = pnand %p438_p6, %p432_p3 }
  0x10   :  { %442 = shalt.err (!%p439_p7)
}
  0x11   :  { %s516_s28 = smov 64   ;;  %s517_s29 = smov 4  }
  0x12   :  { %34 = dma.hbm_to_vmem [thread:$0]  %s614_s1, 1024, %s29_s19, [#allocation6], %s516_s28, %s516_s28, %s517_s29  }
  0x13   :  { %s518_s7 = smov [#allocation2]   ;;  %s519_s9 = smov [#allocation7]  }
  0x14   :  { %s19_s8 = sshll.u32 %s518_s7, 4  ;;  %s42_s10 = sshll.u32 %s519_s9, 4  ;;  %s20_s8 = int_to_ptr.vmem [resolvable:$true] %s19_s8  ;;  %s43_s10 = int_to_ptr.vmem [resolvable:$true] %s42_s10 }
  0x15   :  { %s443_s13 = scalar_lea.hbm %s613_s0, 64 }
  0x16   :  { %p444_p8 = scmp.ne.s32.totalorder %s613_s0, %s443_s13  ;;  %p447_p9 = scmp.lt.u32.totalorder %s443_s13, %s613_s0 }
  0x18   :  { %p449_p10 = pnand %p447_p9, %p444_p8 }
  0x1a   :  { %452 = shalt.err (!%p449_p10)
}
  0x1b   :  { %s453_s1 = scalar_lea.vmem %s20_s8, 64  ;;  %p458_p12 = scmp.lt.s32.totalorder %s20_s8, %s20_s8 }
  0x1c   :  { %p454_p11 = scmp.ne.s32.totalorder %s20_s8, %s453_s1  ;;  %p459_p13 = scmp.lt.s32.totalorder %s453_s1, %s453_s1 }
  0x1e   :  { %p460_p0 = por %p459_p13, %p458_p12 }
  0x20   :  { %p461_p1 = pnand %p460_p0, %p454_p11 }
  0x22   :  { %464 = shalt.err (!%p461_p1)
}
  0x23   :  { %22 = dma.hbm_to_vmem [thread:$0]  %s613_s0, 64, %s20_s8, [#allocation3]  }
  0x24   :  { %s465_s22 = scalar_lea.hbm %s616_s3, 1024 }
  0x25   :  { %p466_p2 = scmp.ne.s32.totalorder %s616_s3, %s465_s22  ;;  %p469_p3 = scmp.lt.u32.totalorder %s465_s22, %s616_s3 }
  0x27   :  { %p471_p4 = pnand %p469_p3, %p466_p2 }
  0x29   :  { %474 = shalt.err (!%p471_p4)
}
  0x2a   :  { %s475_s27 = scalar_lea.vmem %s43_s10, 1024  ;;  %p480_p6 = scmp.lt.s32.totalorder %s43_s10, %s43_s10 }
  0x2b   :  { %p476_p5 = scmp.ne.s32.totalorder %s43_s10, %s475_s27  ;;  %p481_p7 = scmp.lt.s32.totalorder %s475_s27, %s475_s27 }
  0x2d   :  { %p482_p8 = por %p481_p7, %p480_p6 }
  0x2f   :  { %p483_p9 = pnand %p482_p8, %p476_p5 }
  0x31   :  { %486 = shalt.err (!%p483_p9)
}
  0x32   :  { %48 = dma.hbm_to_vmem [thread:$0]  %s616_s3, 1024, %s43_s10, [#allocation6], %s516_s28, %s516_s28, %s517_s29  }
  0x33   :  { %509 = dma.done.wait [#allocation3], 64  }
  0x34   :  { %510 = vsyncadd [#allocation3], 4294967232 }
  0x35   :  { %511 = dma.done.wait [#allocation6], 2048  }
  0x36   :  { %512 = vsyncadd [#allocation6], 4294965248  ;;  %v520_v0 = vmov 0.0   ;;  %vm521_vm0 = vmmov 0   ;;  %v397_v1 = vld [vmem:[#allocation5] sm:$0xff]   ;;  %v398_v2 = vld [vmem:[#allocation5 + $0x8] sm:$0xff]  }
  0x37   :  { %349 = vmatprep.subr.bf16.mxu0 %v520_v0  ;;  %365 = vmatprep.mubr.msk.bf16.mxu0 %vm521_vm0, %v520_v0  ;;  %v399_v3 = vld [vmem:[#allocation5 + $0x10] sm:$0xff]   ;;  %v400_v4 = vld [vmem:[#allocation5 + $0x18] sm:$0xff]   ;;  %v401_v5 = vld [vmem:[#allocation5 + $0x20] sm:$0xff]  }
  0x38   :  { %369 = vmatprep.subr.bf16.mxu1 %v520_v0  ;;  %385 = vmatprep.mubr.msk.bf16.mxu1 %vm521_vm0, %v520_v0  ;;  %v402_v6 = vld [vmem:[#allocation5 + $0x28] sm:$0xff]   ;;  %v403_v7 = vld [vmem:[#allocation5 + $0x30] sm:$0xff]   ;;  %v404_v8 = vld [vmem:[#allocation5 + $0x38] sm:$0xff]  }
  0x39   :  { %350 = vmatpush3.bf16.msra.mxu0 %v397_v1  ;;  %v61_v9 = vld [vmem:[#allocation2] sm:$0xf]  ;;  %v405_v10 = vld [vmem:[#allocation7] sm:$0xff]   ;;  %v406_v11 = vld [vmem:[#allocation7 + $0x8] sm:$0xff]  }
  0x3a   :  { %351 = vmatprep.subr.bf16.mxu0 %v520_v0  ;;  %370 = vmatpush3.bf16.msra.mxu1 %v405_v10  ;;  %v407_v12 = vld [vmem:[#allocation7 + $0x10] sm:$0xff]   ;;  %v408_v13 = vld [vmem:[#allocation7 + $0x18] sm:$0xff]   ;;  %v409_v14 = vld [vmem:[#allocation7 + $0x20] sm:$0xff]  }
  0x3b   :  { %371 = vmatprep.subr.bf16.mxu1 %v520_v0  ;;  %v410_v15 = vld [vmem:[#allocation7 + $0x28] sm:$0xff]   ;;  %v411_v16 = vld [vmem:[#allocation7 + $0x30] sm:$0xff]   ;;  %v412_v17 = vld [vmem:[#allocation7 + $0x38] sm:$0xff]  }
  0x3c   :  { %v313_v18 = vld [vmem:[%s615_s2] ss:$0 sm:$0xff]  ;;  %s522_s2 = smov [#allocation8]  }
  0x3d   :  { %352 = vmatpush3.bf16.msra.mxu0 %v398_v2  ;;  %v322_v30 = vld [vmem:[%s617_s4] ss:$0 sm:$0xff]  ;;  %s303_s7 = sshll.u32 %s522_s2, 4  ;;  %s304_s7 = int_to_ptr.vmem [resolvable:$true] %s303_s7 }
  0x3e   :  { %353 = vmatprep.subr.bf16.mxu0 %v520_v0  ;;  %372 = vmatpush3.bf16.msra.mxu1 %v406_v11  ;;  %s487_s8 = scalar_lea.vmem %s304_s7, 64  ;;  %p492_p11 = scmp.lt.s32.totalorder %s304_s7, %s304_s7 }
  0x3f   :  { %373 = vmatprep.subr.bf16.mxu1 %v520_v0  ;;  %p488_p10 = scmp.ne.s32.totalorder %s304_s7, %s487_s8  ;;  %p493_p12 = scmp.lt.s32.totalorder %s487_s8, %s487_s8 }
  0x41   :  { %354 = vmatpush3.bf16.msra.mxu0 %v399_v3  ;;  %p494_p13 = por %p493_p12, %p492_p11 }
  0x42   :  { %355 = vmatprep.subr.bf16.mxu0 %v520_v0  ;;  %374 = vmatpush3.bf16.msra.mxu1 %v407_v12 }
  0x43   :  { %375 = vmatprep.subr.bf16.mxu1 %v520_v0  ;;  %p495_p0 = pnand %p494_p13, %p488_p10 }
  0x45   :  { %356 = vmatpush3.bf16.msra.mxu0 %v400_v4 }
  0x46   :  { %357 = vmatprep.subr.bf16.mxu0 %v520_v0  ;;  %376 = vmatpush3.bf16.msra.mxu1 %v408_v13 }
  0x47   :  { %377 = vmatprep.subr.bf16.mxu1 %v520_v0 }
  0x49   :  { %358 = vmatpush3.bf16.msra.mxu0 %v401_v5 }
  0x4a   :  { %359 = vmatprep.subr.bf16.mxu0 %v520_v0  ;;  %378 = vmatpush3.bf16.msra.mxu1 %v409_v14 }
  0x4b   :  { %379 = vmatprep.subr.bf16.mxu1 %v520_v0 }
  0x4d   :  { %360 = vmatpush3.bf16.msra.mxu0 %v402_v6 }
  0x4e   :  { %361 = vmatprep.subr.bf16.mxu0 %v520_v0  ;;  %380 = vmatpush3.bf16.msra.mxu1 %v410_v15 }
  0x4f   :  { %381 = vmatprep.subr.bf16.mxu1 %v520_v0 }
  0x51   :  { %362 = vmatpush3.bf16.msra.mxu0 %v403_v7 }
  0x52   :  { %363 = vmatprep.subr.bf16.mxu0 %v520_v0  ;;  %382 = vmatpush3.bf16.msra.mxu1 %v411_v16 }
  0x53   :  { %383 = vmatprep.subr.bf16.mxu1 %v520_v0 }
  0x55   :  { %364 = vmatpush3.bf16.msra.mxu0 %v404_v8 }
  0x56   :  { %384 = vmatpush3.bf16.msra.mxu1 %v412_v17 }
  0x58   :  { %366 = vmatmul.mubr.bf16.vlgmr.msra.gmra.mrb[0].mxu0 %v61_v9 }
 0x12b   :  { %v167_v19 = vpop.f32.mrb[0].mxu0 }
 0x12c   :  { %v168_v20 = vadd.f32 %v313_v18, %v167_v19  ;;  %v367_v21 = vpop.f32.mrb[1].mxu0 }
 0x12d   :  { %v170_v22 = vpop.f32.mrb[2].mxu0 }
 0x12e   :  { %v173_v23 = vsub.f32 0.0, %v168_v20  ;;  %v368_v24 = vpop.f32.mrb[3].mxu0 }
 0x130   :  { %v174_v25 = vmul.f32 1.442695, %v173_v23 }
 0x132   :  { %413 = vpow2.f32 %v174_v25 }
 0x13c   :  { %v414_v26 = vpop.eup %413 }
 0x13d   :  { %v176_v27 = vadd.f32 1.0, %v414_v26 }
 0x13f   :  { %415 = vrcp.f32 %v176_v27 }
 0x149   :  { %v416_v28 = vpop.eup %415 }
 0x14a   :  { %v178_v29 = vpack.c.bf16 %v416_v28, %v416_v28 }
 0x14c   :  { %386 = vmatmul.mubr.bf16.vlgmr.msra.gmra.mrb[0].mxu1 %v178_v29 }
 0x21f   :  { %v284_v31 = vpop.f32.mrb[0].mxu1 }
 0x220   :  { %v285_v32 = vadd.f32 %v322_v30, %v284_v31  ;;  %v387_v33 = vpop.f32.mrb[1].mxu1 }
 0x221   :  { %v287_v34 = vpop.f32.mrb[2].mxu1 }
 0x222   :  { %v290_v35 = vsub.f32 0.0, %v285_v32  ;;  %v388_v36 = vpop.f32.mrb[3].mxu1 }
 0x224   :  { %v291_v37 = vmul.f32 1.442695, %v290_v35 }
 0x226   :  { %417 = vpow2.f32 %v291_v37 }
 0x230   :  { %v418_v38 = vpop.eup %417 }
 0x231   :  { %v293_v39 = vadd.f32 1.0, %v418_v38 }
 0x233   :  { %419 = vrcp.f32 %v293_v39 }
 0x23d   :  { %v420_v40 = vpop.eup %419 }
 0x23e   :  { %v295_v41 = vpack.c.bf16 %v420_v40, %v420_v40 }
 0x240   :  { %296 = vst [vmem:[#allocation8] sm:$0xf] %v295_v41 }
 0x241   :  { %498 = shalt.err (!%p495_p0)
}
 0x242   :  { %s499_s10 = scalar_lea.hbm %s618_s5, 64 }
 0x243   :  { %p500_p1 = scmp.ne.s32.totalorder %s618_s5, %s499_s10  ;;  %p503_p2 = scmp.lt.u32.totalorder %s499_s10, %s618_s5 }
 0x245   :  { %p505_p3 = pnand %p503_p2, %p500_p1 }
 0x247   :  { %508 = shalt.err (!%p505_p3)
}
 0x248   :  { %306 = dma.vmem_to_hbm [thread:$0]  %s304_s7, 64, %s618_s5, [#allocation4]  }
 0x249   :  { %513 = dma.done.wait [#allocation4], 64  }
 0x24a   :  { %514 = vsyncadd [#allocation4], 4294967232 }
 0x24b   :  { %310 = vsyncpa [#allocation3], 1 }
 0x24c   :  { %311 = vsyncpa [#allocation6], 1 }
 0x24d   :  { %312 = vsyncpa [#allocation4], 1 }

// kernel: tpu_custom_call.1
= control target key start
LH: loop header
LB: loop body
LE: loop exit
PB: predicated region body
PF: predicated region fallthrough
CT: control target
= control target key end

     0   :  { %10 = vsyncpa [#allocation3], 0  ;;  %s613_s0 = inlined_call_operand.hbm [shape: bf16[8,128], index: 0, kind: input, shape index: {}]   ;;  %s614_s1 = inlined_call_operand.hbm [shape: bf16[128,128], index: 1, kind: input, shape index: {}]   ;;  %s615_s2 = inlined_call_operand.vmem [shape: f32[1,128], index: 2, kind: input, shape index: {}]   ;;  %s616_s3 = inlined_call_operand.hbm [shape: bf16[128,128], index: 3, kind: input, shape index: {}]   ;;  %s617_s4 = inlined_call_operand.vmem [shape: f32[1,128], index: 4, kind: input, shape index: {}]   ;;  %s618_s5 = inlined_call_operand.hbm [shape: bf16[8,128], index: 5, kind: output, shape index: {}]  }
   0x1   :  { %11 = vsyncpa [#allocation6], 0 }
   0x2   :  { %12 = vsyncpa [#allocation4], 0  ;;  %s515_s18 = smov [#allocation5]   ;;  %s421_s22 = scalar_lea.hbm %s614_s1, 1024 }
   0x3   :  { %s28_s19 = sshll.u32 %s515_s18, 4  ;;  %p422_p0 = scmp.ne.s32.totalorder %s614_s1, %s421_s22  ;;  %s29_s19 = int_to_ptr.vmem [resolvable:$true] %s28_s19 }
   0x4   :  { %p425_p1 = scmp.lt.u32.totalorder %s421_s22, %s614_s1 }
   0x6   :  { %p427_p2 = pnand %p425_p1, %p422_p0 }
   0x8   :  { %430 = shalt.err (!%p427_p2)
}
   0x9   :  { %s431_s27 = scalar_lea.vmem %s29_s19, 1024  ;;  %p436_p4 = scmp.lt.s32.totalorder %s29_s19, %s29_s19 }
   0xa   :  { %p432_p3 = scmp.ne.s32.totalorder %s29_s19, %s431_s27  ;;  %p437_p5 = scmp.lt.s32.totalorder %s431_s27, %s431_s27 }
   0xc   :  { %p438_p6 = por %p437_p5, %p436_p4 }
   0xe   :  { %p439_p7 = pnand %p438_p6, %p432_p3 }
  0x10   :  { %442 = shalt.err (!%p439_p7)
}
  0x11   :  { %s516_s28 = smov 64   ;;  %s517_s29 = smov 4  }
  0x12   :  { %34 = dma.hbm_to_vmem [thread:$0]  %s614_s1, 1024, %s29_s19, [#allocation6], %s516_s28, %s516_s28, %s517_s29  }
  0x13   :  { %s518_s7 = smov [#allocation2]   ;;  %s519_s9 = smov [#allocation7]  }
  0x14   :  { %s19_s8 = sshll.u32 %s518_s7, 4  ;;  %s42_s10 = sshll.u32 %s519_s9, 4  ;;  %s20_s8 = int_to_ptr.vmem [resolvable:$true] %s19_s8  ;;  %s43_s10 = int_to_ptr.vmem [resolvable:$true] %s42_s10 }
  0x15   :  { %s443_s13 = scalar_lea.hbm %s613_s0, 64 }
  0x16   :  { %p444_p8 = scmp.ne.s32.totalorder %s613_s0, %s443_s13  ;;  %p447_p9 = scmp.lt.u32.totalorder %s443_s13, %s613_s0 }
  0x18   :  { %p449_p10 = pnand %p447_p9, %p444_p8 }
  0x1a   :  { %452 = shalt.err (!%p449_p10)
}
  0x1b   :  { %s453_s1 = scalar_lea.vmem %s20_s8, 64  ;;  %p458_p12 = scmp.lt.s32.totalorder %s20_s8, %s20_s8 }
  0x1c   :  { %p454_p11 = scmp.ne.s32.totalorder %s20_s8, %s453_s1  ;;  %p459_p13 = scmp.lt.s32.totalorder %s453_s1, %s453_s1 }
  0x1e   :  { %p460_p0 = por %p459_p13, %p458_p12 }
  0x20   :  { %p461_p1 = pnand %p460_p0, %p454_p11 }
  0x22   :  { %464 = shalt.err (!%p461_p1)
}
  0x23   :  { %22 = dma.hbm_to_vmem [thread:$0]  %s613_s0, 64, %s20_s8, [#allocation3]  }
  0x24   :  { %s465_s22 = scalar_lea.hbm %s616_s3, 1024 }
  0x25   :  { %p466_p2 = scmp.ne.s32.totalorder %s616_s3, %s465_s22  ;;  %p469_p3 = scmp.lt.u32.totalorder %s465_s22, %s616_s3 }
  0x27   :  { %p471_p4 = pnand %p469_p3, %p466_p2 }
  0x29   :  { %474 = shalt.err (!%p471_p4)
}
  0x2a   :  { %s475_s27 = scalar_lea.vmem %s43_s10, 1024  ;;  %p480_p6 = scmp.lt.s32.totalorder %s43_s10, %s43_s10 }
  0x2b   :  { %p476_p5 = scmp.ne.s32.totalorder %s43_s10, %s475_s27  ;;  %p481_p7 = scmp.lt.s32.totalorder %s475_s27, %s475_s27 }
  0x2d   :  { %p482_p8 = por %p481_p7, %p480_p6 }
  0x2f   :  { %p483_p9 = pnand %p482_p8, %p476_p5 }
  0x31   :  { %486 = shalt.err (!%p483_p9)
}
  0x32   :  { %48 = dma.hbm_to_vmem [thread:$0]  %s616_s3, 1024, %s43_s10, [#allocation6], %s516_s28, %s516_s28, %s517_s29  }
  0x33   :  { %509 = dma.done.wait [#allocation3], 64  }
  0x34   :  { %510 = vsyncadd [#allocation3], 4294967232 }
  0x35   :  { %511 = dma.done.wait [#allocation6], 2048  }
  0x36   :  { %512 = vsyncadd [#allocation6], 4294965248  ;;  %v520_v0 = vmov 0.0   ;;  %vm521_vm0 = vmmov 0   ;;  %v397_v1 = vld [vmem:[#allocation5] sm:$0xff]   ;;  %v398_v2 = vld [vmem:[#allocation5 + $0x8] sm:$0xff]  }
  0x37   :  { %349 = vmatprep.subr.bf16.mxu0 %v520_v0  ;;  %365 = vmatprep.mubr.msk.bf16.mxu0 %vm521_vm0, %v520_v0  ;;  %v399_v3 = vld [vmem:[#allocation5 + $0x10] sm:$0xff]   ;;  %v400_v4 = vld [vmem:[#allocation5 + $0x18] sm:$0xff]   ;;  %v401_v5 = vld [vmem:[#allocation5 + $0x20] sm:$0xff]  }
  0x38   :  { %369 = vmatprep.subr.bf16.mxu1 %v520_v0  ;;  %385 = vmatprep.mubr.msk.bf16.mxu1 %vm521_vm0, %v520_v0  ;;  %v402_v6 = vld [vmem:[#allocation5 + $0x28] sm:$0xff]   ;;  %v403_v7 = vld [vmem:[#allocation5 + $0x30] sm:$0xff]   ;;  %v404_v8 = vld [vmem:[#allocation5 + $0x38] sm:$0xff]  }
  0x39   :  { %350 = vmatpush3.bf16.msra.mxu0 %v397_v1  ;;  %v61_v9 = vld [vmem:[#allocation2] sm:$0xf]  ;;  %v405_v10 = vld [vmem:[#allocation7] sm:$0xff]   ;;  %v406_v11 = vld [vmem:[#allocation7 + $0x8] sm:$0xff]  }
  0x3a   :  { %351 = vmatprep.subr.bf16.mxu0 %v520_v0  ;;  %370 = vmatpush3.bf16.msra.mxu1 %v405_v10  ;;  %v407_v12 = vld [vmem:[#allocation7 + $0x10] sm:$0xff]   ;;  %v408_v13 = vld [vmem:[#allocation7 + $0x18] sm:$0xff]   ;;  %v409_v14 = vld [vmem:[#allocation7 + $0x20] sm:$0xff]  }
  0x3b   :  { %371 = vmatprep.subr.bf16.mxu1 %v520_v0  ;;  %v410_v15 = vld [vmem:[#allocation7 + $0x28] sm:$0xff]   ;;  %v411_v16 = vld [vmem:[#allocation7 + $0x30] sm:$0xff]   ;;  %v412_v17 = vld [vmem:[#allocation7 + $0x38] sm:$0xff]  }
  0x3c   :  { %v313_v18 = vld [vmem:[%s615_s2] ss:$0 sm:$0xff]  ;;  %s522_s2 = smov [#allocation8]  }
  0x3d   :  { %352 = vmatpush3.bf16.msra.mxu0 %v398_v2  ;;  %v322_v30 = vld [vmem:[%s617_s4] ss:$0 sm:$0xff]  ;;  %s303_s7 = sshll.u32 %s522_s2, 4  ;;  %s304_s7 = int_to_ptr.vmem [resolvable:$true] %s303_s7 }
  0x3e   :  { %353 = vmatprep.subr.bf16.mxu0 %v520_v0  ;;  %372 = vmatpush3.bf16.msra.mxu1 %v406_v11  ;;  %s487_s8 = scalar_lea.vmem %s304_s7, 64  ;;  %p492_p11 = scmp.lt.s32.totalorder %s304_s7, %s304_s7 }
  0x3f   :  { %373 = vmatprep.subr.bf16.mxu1 %v520_v0  ;;  %p488_p10 = scmp.ne.s32.totalorder %s304_s7, %s487_s8  ;;  %p493_p12 = scmp.lt.s32.totalorder %s487_s8, %s487_s8 }
  0x41   :  { %354 = vmatpush3.bf16.msra.mxu0 %v399_v3  ;;  %p494_p13 = por %p493_p12, %p492_p11 }
  0x42   :  { %355 = vmatprep.subr.bf16.mxu0 %v520_v0  ;;  %374 = vmatpush3.bf16.msra.mxu1 %v407_v12 }
  0x43   :  { %375 = vmatprep.subr.bf16.mxu1 %v520_v0  ;;  %p495_p0 = pnand %p494_p13, %p488_p10 }
  0x45   :  { %356 = vmatpush3.bf16.msra.mxu0 %v400_v4 }
  0x46   :  { %357 = vmatprep.subr.bf16.mxu0 %v520_v0  ;;  %376 = vmatpush3.bf16.msra.mxu1 %v408_v13 }
  0x47   :  { %377 = vmatprep.subr.bf16.mxu1 %v520_v0 }
  0x49   :  { %358 = vmatpush3.bf16.msra.mxu0 %v401_v5 }
  0x4a   :  { %359 = vmatprep.subr.bf16.mxu0 %v520_v0  ;;  %378 = vmatpush3.bf16.msra.mxu1 %v409_v14 }
  0x4b   :  { %379 = vmatprep.subr.bf16.mxu1 %v520_v0 }
  0x4d   :  { %360 = vmatpush3.bf16.msra.mxu0 %v402_v6 }
  0x4e   :  { %361 = vmatprep.subr.bf16.mxu0 %v520_v0  ;;  %380 = vmatpush3.bf16.msra.mxu1 %v410_v15 }
  0x4f   :  { %381 = vmatprep.subr.bf16.mxu1 %v520_v0 }
  0x51   :  { %362 = vmatpush3.bf16.msra.mxu0 %v403_v7 }
  0x52   :  { %363 = vmatprep.subr.bf16.mxu0 %v520_v0  ;;  %382 = vmatpush3.bf16.msra.mxu1 %v411_v16 }
  0x53   :  { %383 = vmatprep.subr.bf16.mxu1 %v520_v0 }
  0x55   :  { %364 = vmatpush3.bf16.msra.mxu0 %v404_v8 }
  0x56   :  { %384 = vmatpush3.bf16.msra.mxu1 %v412_v17 }
  0x58   :  { %366 = vmatmul.mubr.bf16.vlgmr.msra.gmra.mrb[0].mxu0 %v61_v9 }
 0x12b   :  { %v167_v19 = vpop.f32.mrb[0].mxu0 }
 0x12c   :  { %v168_v20 = vadd.f32 %v313_v18, %v167_v19  ;;  %v367_v21 = vpop.f32.mrb[1].mxu0 }
 0x12d   :  { %v170_v22 = vpop.f32.mrb[2].mxu0 }
 0x12e   :  { %v173_v23 = vsub.f32 0.0, %v168_v20  ;;  %v368_v24 = vpop.f32.mrb[3].mxu0 }
 0x130   :  { %v174_v25 = vmul.f32 1.442695, %v173_v23 }
 0x132   :  { %413 = vpow2.f32 %v174_v25 }
 0x13c   :  { %v414_v26 = vpop.eup %413 }
 0x13d   :  { %v176_v27 = vadd.f32 1.0, %v414_v26 }
 0x13f   :  { %415 = vrcp.f32 %v176_v27 }
 0x149   :  { %v416_v28 = vpop.eup %415 }
 0x14a   :  { %v178_v29 = vpack.c.bf16 %v416_v28, %v416_v28 }
 0x14c   :  { %386 = vmatmul.mubr.bf16.vlgmr.msra.gmra.mrb[0].mxu1 %v178_v29 }
 0x21f   :  { %v284_v31 = vpop.f32.mrb[0].mxu1 }
 0x220   :  { %v285_v32 = vadd.f32 %v322_v30, %v284_v31  ;;  %v387_v33 = vpop.f32.mrb[1].mxu1 }
 0x221   :  { %v287_v34 = vpop.f32.mrb[2].mxu1 }
 0x222   :  { %v290_v35 = vsub.f32 0.0, %v285_v32  ;;  %v388_v36 = vpop.f32.mrb[3].mxu1 }
 0x224   :  { %v291_v37 = vmul.f32 1.442695, %v290_v35 }
 0x226   :  { %417 = vpow2.f32 %v291_v37 }
 0x230   :  { %v418_v38 = vpop.eup %417 }
 0x231   :  { %v293_v39 = vadd.f32 1.0, %v418_v38 }
 0x233   :  { %419 = vrcp.f32 %v293_v39 }
 0x23d   :  { %v420_v40 = vpop.eup %419 }
 0x23e   :  { %v295_v41 = vpack.c.bf16 %v420_v40, %v420_v40 }
 0x240   :  { %296 = vst [vmem:[#allocation8] sm:$0xf] %v295_v41 }
 0x241   :  { %498 = shalt.err (!%p495_p0)
}
 0x242   :  { %s499_s10 = scalar_lea.hbm %s618_s5, 64 }
 0x243   :  { %p500_p1 = scmp.ne.s32.totalorder %s618_s5, %s499_s10  ;;  %p503_p2 = scmp.lt.u32.totalorder %s499_s10, %s618_s5 }
 0x245   :  { %p505_p3 = pnand %p503_p2, %p500_p1 }
 0x247   :  { %508 = shalt.err (!%p505_p3)
}
 0x248   :  { %306 = dma.vmem_to_hbm [thread:$0]  %s304_s7, 64, %s618_s5, [#allocation4]  }
 0x249   :  { %513 = dma.done.wait [#allocation4], 64  }
 0x24a   :  { %514 = vsyncadd [#allocation4], 4294967232 }
 0x24b   :  { %310 = vsyncpa [#allocation3], 1 }
 0x24c   :  { %311 = vsyncpa [#allocation6], 1 }
 0x24d   :  { %312 = vsyncpa [#allocation4], 1 }

</bundles_post_ra>
